<compile_context>
chip_gen: v7x
topology: tpu7x:2x2x1
jax: 0.10.0
libtpu: 0.0.40
codegen_flags: <defaults>
</compile_context>

<pallas_src>
import numpy as np
import jax
import jax.numpy as jnp
from jax.experimental import pallas as pl
from jax.experimental.pallas import tpu as pltpu

_LANES = 128  # TPU vreg lane width


def _round_up(x, m):
    return ((x + m - 1) // m) * m


# ----------------------------------------------------------------------------
# Kernels
# ----------------------------------------------------------------------------
def _time_encoder_packed_kernel(ts_ref, w_ref, phase_ref, out_ref):
    """Lane-dense path: G = 128 // D consecutive rows packed per output row.

    ts_ref:    (TM, G)      f32   -- G timestamps per packed output row
    w_ref:     (G, G*D)     f32   -- W[g, g*D + d] = freq[d], 0 elsewhere
    phase_ref: (1, G*D)     f32   -- phase tiled G times
    out_ref:   (TM, G*D)          -- full 128-lane rows (unmasked stores)
    """
    ts = ts_ref[...]                      # (TM, G)
    w = w_ref[...]                        # (G, G*D)
    g_count = ts.shape[1]

    # acc[r, l] = ts[r, l // D] * freq[l % D]   via G rank-1 VPU updates.
    # Each term is a (TM, 1) x (1, G*D) stride-0 broadcast multiply; the
    # zero entries of W keep the math exact (x * 0 == 0, x + 0 == x).
    acc = ts[:, 0:1] * w[0:1, :]
    for g in range(1, g_count):
        acc = acc + ts[:, g:g + 1] * w[g:g + 1, :]

    out_ref[...] = jnp.cos(acc + phase_ref[...]).astype(out_ref.dtype)


def _time_encoder_simple_kernel(ts_ref, freq_ref, phase_ref, out_ref):
    """Fallback path (D >= 128 or 128 % D != 0): one row per position.

    ts_ref:    (TM, 1)  f32
    freq_ref:  (1, D)   f32
    phase_ref: (1, D)   f32
    out_ref:   (TM, D)
    """
    val = ts_ref[...] * freq_ref[...] + phase_ref[...]   # (TM,1)x(1,D) broadcast
    out_ref[...] = jnp.cos(val).astype(out_ref.dtype)


# ----------------------------------------------------------------------------
# Wrapper
# ----------------------------------------------------------------------------
def time_encoder(ts, basis_freq, phase, *, out_dtype=jnp.float32,
                 tile_rows=1024):
    """Pallas-backed TimeEncoder.forward.

    ts:         (B, L) float
    basis_freq: (D,)   float
    phase:      (D,)   float
    returns:    (B, L, D) out_dtype
    """
    B, L = ts.shape
    D = int(basis_freq.shape[0])
    n = B * L

    ts_f = ts.astype(jnp.float32).reshape(n)
    freq = basis_freq.astype(jnp.float32)
    ph = phase.astype(jnp.float32)

    compiler_params = pltpu.CompilerParams(
        dimension_semantics=("parallel",),       # megacore sharding on v7x
        vmem_limit_bytes=32 * 1024 * 1024,       # safe on v5e/v6e/v7x
    )

    use_packed = (D < _LANES) and (_LANES % D == 0) and (n % (_LANES // D) == 0)

    if use_packed:
        G = _LANES // D
        R = n // G
        GD = G * D

        ts_p = ts_f.reshape(R, G)
        # W[g, g*D + d] = freq[d]; zero elsewhere.  Tiny ((G, 128) f32).
        W = (jnp.eye(G, dtype=jnp.float32)[:, :, None]
             * freq[None, None, :]).reshape(G, GD)
        ph_t = jnp.tile(ph, G).reshape(1, GD)

        tm = min(int(tile_rows), _round_up(R, 8))   # multiple of 8
        grid = (pl.cdiv(R, tm),)

        out = pl.pallas_call(
            _time_encoder_packed_kernel,
            out_shape=jax.ShapeDtypeStruct((R, GD), out_dtype),
            grid=grid,
            in_specs=[
                pl.BlockSpec((tm, G), lambda i: (i, 0)),
                pl.BlockSpec((G, GD), lambda i: (0, 0)),   # resident params
                pl.BlockSpec((1, GD), lambda i: (0, 0)),   # resident params
            ],
            out_specs=pl.BlockSpec((tm, GD), lambda i: (i, 0)),
            compiler_params=compiler_params,
        )(ts_p, W, ph_t)
        return out.reshape(B, L, D)

    # Fallback: D already lane-dense (>= 128) or not a divisor of 128.
    ts_c = ts_f.reshape(n, 1)
    freq2 = freq.reshape(1, D)
    ph2 = ph.reshape(1, D)

    tm = min(int(tile_rows), _round_up(n, 8))       # multiple of 8
    grid = (pl.cdiv(n, tm),)

    out = pl.pallas_call(
        _time_encoder_simple_kernel,
        out_shape=jax.ShapeDtypeStruct((n, D), out_dtype),
        grid=grid,
        in_specs=[
            pl.BlockSpec((tm, 1), lambda i: (i, 0)),
            pl.BlockSpec((1, D), lambda i: (0, 0)),
            pl.BlockSpec((1, D), lambda i: (0, 0)),
        ],
        out_specs=pl.BlockSpec((tm, D), lambda i: (i, 0)),
        compiler_params=compiler_params,
    )(ts_c, freq2, ph2)
    return out.reshape(B, L, D)


def make_time_encoder_params(time_dim):
    """Deterministic parameter init, mirrors TimeEncoder.__init__."""
    basis_freq = (1.0 / 10.0 ** np.linspace(0, 9, time_dim)).astype(np.float32)
    phase = np.zeros(time_dim, dtype=np.float32)
    return jnp.asarray(basis_freq), jnp.asarray(phase)


def _reference(ts, basis_freq, phase):
    return jnp.cos(ts[:, :, None] * basis_freq[None, None, :]
                   + phase[None, None, :])


if __name__ == "__main__":
    key = jax.random.PRNGKey(0)

    # --- main test: CAW-typical time_dim (packed, lane-dense path) ---------
    B, L, D = 2, 16, 32
    ts = jax.random.uniform(key, (B, L), dtype=jnp.float32) * 100.0
    basis_freq, phase = make_time_encoder_params(D)

    out = jax.block_until_ready(time_encoder(ts, basis_freq, phase))
    ref = _reference(ts, basis_freq, phase)
    np.testing.assert_allclose(np.asarray(out), np.asarray(ref),
                               rtol=1e-5, atol=1e-5)
    assert out.shape == (B, L, D)
    assert out.dtype == jnp.float32

    # --- fallback path test: D that does not divide 128 --------------------
    D2 = 48
    basis_freq2, phase2 = make_time_encoder_params(D2)
    out2 = jax.block_until_ready(time_encoder(ts, basis_freq2, phase2))
    ref2 = _reference(ts, basis_freq2, phase2)
    np.testing.assert_allclose(np.asarray(out2), np.asarray(ref2),
                               rtol=1e-5, atol=1e-5)
    assert out2.shape == (B, L, D2)

    print("KERNEL_OK")
</pallas_src>

<mosaic_0001>
module attributes {stable_mosaic.version = 11 : i64} {
  func.func @_time_encoder_packed_kernel(%arg0: i32, %arg1: memref<8x4xf32, #tpu.memory_space<vmem>>, %arg2: memref<4x128xf32, #tpu.memory_space<vmem>>, %arg3: memref<1x128xf32, #tpu.memory_space<vmem>>, %arg4: memref<8x128xf32, #tpu.memory_space<vmem>>) attributes {dimension_semantics = [#tpu.dimension_semantics<parallel>], iteration_bounds = array<i64: 1>, scalar_prefetch = 0 : i64, scratch_operands = 0 : i64, tpu.core_type = #tpu.core_type<tc>, window_params = [{transform_indices = @transform_0, window_bounds = array<i64: 8, 4>}, {pipeline_mode = #tpu.pipeline_mode<synchronous>, transform_indices = @transform_1, window_bounds = array<i64: 4, 128>}, {pipeline_mode = #tpu.pipeline_mode<synchronous>, transform_indices = @transform_2, window_bounds = array<i64: 1, 128>}, {transform_indices = @transform_3, window_bounds = array<i64: 8, 128>}]} {
    %c0 = arith.constant 0 : index
    %c0_0 = arith.constant 0 : index
    %0 = vector.load %arg1[%c0, %c0_0] : memref<8x4xf32, #tpu.memory_space<vmem>>, vector<8x4xf32>
    %c0_1 = arith.constant 0 : index
    %c0_2 = arith.constant 0 : index
    %1 = vector.load %arg2[%c0_1, %c0_2] : memref<4x128xf32, #tpu.memory_space<vmem>>, vector<4x128xf32>
    %2 = vector.extract_strided_slice %0 {offsets = [0, 0], sizes = [8, 1], strides = [1, 1]} : vector<8x4xf32> to vector<8x1xf32>
    %3 = vector.extract_strided_slice %1 {offsets = [0, 0], sizes = [1, 128], strides = [1, 1]} : vector<4x128xf32> to vector<1x128xf32>
    %4 = vector.broadcast %2 : vector<8x1xf32> to vector<8x128xf32>
    %5 = vector.broadcast %3 : vector<1x128xf32> to vector<8x128xf32>
    %6 = arith.mulf %4, %5 : vector<8x128xf32>
    %7 = vector.extract_strided_slice %0 {offsets = [0, 1], sizes = [8, 1], strides = [1, 1]} : vector<8x4xf32> to vector<8x1xf32>
    %8 = vector.extract_strided_slice %1 {offsets = [1, 0], sizes = [1, 128], strides = [1, 1]} : vector<4x128xf32> to vector<1x128xf32>
    %9 = vector.broadcast %7 : vector<8x1xf32> to vector<8x128xf32>
    %10 = vector.broadcast %8 : vector<1x128xf32> to vector<8x128xf32>
    %11 = arith.mulf %9, %10 : vector<8x128xf32>
    %12 = arith.addf %6, %11 : vector<8x128xf32>
    %13 = vector.extract_strided_slice %0 {offsets = [0, 2], sizes = [8, 1], strides = [1, 1]} : vector<8x4xf32> to vector<8x1xf32>
    %14 = vector.extract_strided_slice %1 {offsets = [2, 0], sizes = [1, 128], strides = [1, 1]} : vector<4x128xf32> to vector<1x128xf32>
    %15 = vector.broadcast %13 : vector<8x1xf32> to vector<8x128xf32>
    %16 = vector.broadcast %14 : vector<1x128xf32> to vector<8x128xf32>
    %17 = arith.mulf %15, %16 : vector<8x128xf32>
    %18 = arith.addf %12, %17 : vector<8x128xf32>
    %19 = vector.extract_strided_slice %0 {offsets = [0, 3], sizes = [8, 1], strides = [1, 1]} : vector<8x4xf32> to vector<8x1xf32>
    %20 = vector.extract_strided_slice %1 {offsets = [3, 0], sizes = [1, 128], strides = [1, 1]} : vector<4x128xf32> to vector<1x128xf32>
    %21 = vector.broadcast %19 : vector<8x1xf32> to vector<8x128xf32>
    %22 = vector.broadcast %20 : vector<1x128xf32> to vector<8x128xf32>
    %23 = arith.mulf %21, %22 : vector<8x128xf32>
    %24 = arith.addf %18, %23 : vector<8x128xf32>
    %c0_3 = arith.constant 0 : index
    %c0_4 = arith.constant 0 : index
    %25 = vector.load %arg3[%c0_3, %c0_4] : memref<1x128xf32, #tpu.memory_space<vmem>>, vector<1x128xf32>
    %26 = vector.broadcast %25 : vector<1x128xf32> to vector<8x128xf32>
    %27 = arith.addf %24, %26 : vector<8x128xf32>
    %28 = math.cos %27 : vector<8x128xf32>
    %c0_5 = arith.constant 0 : index
    %c0_6 = arith.constant 0 : index
    %29 = vector.load %arg4[%c0_5, %c0_6] : memref<8x128xf32, #tpu.memory_space<vmem>>, vector<8x128xf32>
    tpu.vector_store %arg4[%c0_5, %c0_6], %28 {strides = array<i32>} : memref<8x128xf32, #tpu.memory_space<vmem>>, vector<8x128xf32>,
    return
  }
  func.func @transform_0(%arg0: i32) -> (i32, i32) {
    %c0_i32 = arith.constant 0 : i32
    %c0_i32_0 = arith.constant 0 : i32
    return %arg0, %c0_i32 : i32, i32
  }
  func.func @transform_1(%arg0: i32) -> (i32, i32) {
    %c0_i32 = arith.constant 0 : i32
    %c0_i32_0 = arith.constant 0 : i32
    %c0_i32_1 = arith.constant 0 : i32
    return %c0_i32, %c0_i32_0 : i32, i32
  }
  func.func @transform_2(%arg0: i32) -> (i32, i32) {
    %c0_i32 = arith.constant 0 : i32
    %c0_i32_0 = arith.constant 0 : i32
    %c0_i32_1 = arith.constant 0 : i32
    return %c0_i32, %c0_i32_0 : i32, i32
  }
  func.func @transform_3(%arg0: i32) -> (i32, i32) {
    %c0_i32 = arith.constant 0 : i32
    %c0_i32_0 = arith.constant 0 : i32
    return %arg0, %c0_i32 : i32, i32
  }
}

</mosaic_0001>

<bundles_post_ra>
// kernel: tpu_custom_call.1
= control target key start
LH: loop header
LB: loop body
LE: loop exit
PB: predicated region body
PF: predicated region fallthrough
CT: control target
= control target key end

     0   :  { %v236_v1 = vmov 0   ;;  %v237_v2 = vmov 2   ;;  %s309_s0 = inlined_call_operand.vmem [shape: f32[8,4], index: 0, kind: input, shape index: {}]   ;;  %s310_s1 = inlined_call_operand.vmem [shape: f32[4,128], index: 1, kind: input, shape index: {}]   ;;  %s311_s2 = inlined_call_operand.vmem [shape: f32[1,128], index: 2, kind: input, shape index: {}]   ;;  %s312_s3 = inlined_call_operand.hbm [shape: f32[8,128], index: 3, kind: output, shape index: {}]  }
   0x1   :  { %v15_v0 = vld [vmem:[%s309_s0] sm:$0xff]  ;;  %203 = vset.pattern.permute.xlu0 %v236_v1  ;;  %205 = vset.pattern.permute.xlu1 %v237_v2 }
   0x2   :  { %8 = vsyncpa [#allocation3], 0  ;;  %19 = vperm.xlu0 %203, %v15_v0   ;;  %38 = vperm.xlu1 %205, %v15_v0   ;;  %v238_v3 = vmov 1   ;;  %v239_v4 = vmov 3   ;;  %v22_v5 = vlaneseq  ;;  %v16_v9 = vld [vmem:[%s310_s1] sm:$0xf] }
   0x3   :  { %v183_v26 = vld [vmem:[%s311_s2] ss:$0 sm:$0xff]  ;;  %v240_v39 = vmov 683565275   ;;  %v241_v41 = vmov 2475754826  }
   0x4   :  { %v23_v6 = vshrl.u32 %v22_v5, 7  ;;  %v242_v44 = vmov 2131351028   ;;  %v243_v47 = vmov 2102212464   ;;  %s246_s1 = smov [#allocation2]  }
   0x5   :  { %v244_v50 = vmov 920167782   ;;  %v245_v53 = vmov 1326507024   ;;  %s175_s2 = sshll.u32 %s246_s1, 4  ;;  %s176_s2 = int_to_ptr.vmem [resolvable:$true] %s175_s2 }
   0x6   :  { %204 = vset.pattern.permute.xlu0 %v238_v3  ;;  %206 = vset.pattern.permute.xlu1 %v239_v4  ;;  %v24_v7 = vsub.s32 0, %v23_v6  ;;  %v33_v8 = vsub.s32 1, %v23_v6  ;;  %v43_v11 = vsub.s32 2, %v23_v6  ;;  %v53_v13 = vsub.s32 3, %v23_v6  ;;  %s212_s17 = scalar_lea.vmem %s176_s2, 128  ;;  %p217_p1 = scmp.lt.s32.totalorder %s176_s2, %s176_s2 }
   0x7   :  { %28 = vperm.xlu0 %204, %v15_v0   ;;  %48 = vperm.xlu1 %206, %v15_v0   ;;  %p213_p0 = scmp.ne.s32.totalorder %s176_s2, %s212_s17  ;;  %p218_p2 = scmp.lt.s32.totalorder %s212_s17, %s212_s17 }
   0x8   :  { %v25_v14 = vrot.slane %v16_v9, %v24_v7  ;;  %v34_v15 = vrot.slane %v16_v9, %v33_v8  ;;  %v44_v16 = vrot.slane %v16_v9, %v43_v11  ;;  %v54_v17 = vrot.slane %v16_v9, %v53_v13 }
   0x9   :  { %p219_p3 = por %p218_p2, %p217_p1 }
   0xb   :  { %207 = vset.pattern.permute.xlu0 %v239_v4  ;;  %p220_p4 = pnand %p219_p3, %p213_p0 }
  0x81   :  { %v20_v10 = vpop.permute.xlu0 %19  ;;  %v39_v12 = vpop.permute.xlu1 %38 }
  0x82   :  { %v26_v20 = vmul.f32 %v25_v14, %v20_v10  ;;  %v45_v22 = vmul.f32 %v44_v16, %v39_v12 }
  0x86   :  { %v29_v18 = vpop.permute.xlu0 %28  ;;  %v49_v19 = vpop.permute.xlu1 %48 }
  0x87   :  { %v35_v21 = vmul.f32 %v34_v15, %v29_v18  ;;  %v55_v24 = vmul.f32 %v54_v17, %v49_v19 }
  0x89   :  { %v36_v23 = vadd.f32 %v35_v21, %v26_v20 }
  0x8b   :  { %v46_v25 = vadd.f32 %v45_v22, %v36_v23 }
  0x8d   :  { %v56_v27 = vadd.f32 %v55_v24, %v46_v25 }
  0x8f   :  { %v276_v28 = vadd.f32 %v183_v26, %v56_v27 }
  0x91   :  { %v68_v29 = vand.u32 2139095040, %v276_v28  ;;  %v65_v33 = vand.u32 2147483647, %v276_v28  ;;  %vm67_vm7 = vcmp.lt.s32.totalorder %v276_v28, 0  ;;  %vm157_vm12 = vweird.f32 %v276_v28 }
  0x93   :  { %v69_v30 = vshrl.u32 %v68_v29, 23  ;;  %v72_v37 = vand.u32 8388607, %v65_v33  ;;  %vm66_vm8 = vcmp.le.f32.partialorder %v65_v33, 0.7853982 }
  0x95   :  { %v184_v31 = vadd.s32 4294967169, %v69_v30  ;;  %v73_v55 = vor.u32 8388608, %v72_v37 }
  0x97   :  { %v75_v32 = vadd.s32 1, %v184_v31  ;;  %v113_v5 = vshll.u32 %v73_v55, 8 }
  0x99   :  { %vm76_vm0 = vcmp.gt.s32.totalorder %v75_v32, 0 }
  0x9a   :  { %v77_v34 = vsel %vm76_vm0, %v75_v32, 0 }
  0x9b   :  { %v79_v35 = vand.u32 31, %v77_v34  ;;  %v78_v38 = vshrl.u32 %v77_v34, 5 }
  0x9d   :  { %v80_v36 = vsub.s32 32, %v79_v35  ;;  %v82_v40 = vshll.u32 %v240_v39, %v79_v35  ;;  %v85_v42 = vshll.u32 %v241_v41, %v79_v35  ;;  %v88_v46 = vshll.u32 %v242_v44, %v79_v35 }
  0x9e   :  { %v91_v49 = vshll.u32 %v243_v47, %v79_v35  ;;  %v94_v52 = vshll.u32 %v244_v50, %v79_v35  ;;  %vm97_vm1 = vcmp.lt.s32.totalorder %v78_v38, 1  ;;  %vm100_vm2 = vcmp.lt.s32.totalorder %v78_v38, 4 }
  0x9f   :  { %v83_v43 = vshrl.u32 %v241_v41, %v80_v36  ;;  %v86_v45 = vshrl.u32 %v242_v44, %v80_v36  ;;  %v89_v48 = vshrl.u32 %v243_v47, %v80_v36  ;;  %v92_v51 = vshrl.u32 %v244_v50, %v80_v36 }
  0xa0   :  { %v95_v54 = vshrl.u32 %v245_v53, %v80_v36  ;;  %v81_v0 = vshrl.u32 %v240_v39, %v80_v36  ;;  %vm99_vm3 = vcmp.lt.s32.totalorder %v78_v38, 3  ;;  %vm98_vm4 = vcmp.lt.s32.totalorder %v78_v38, 2 }
  0xa1   :  { %v84_v56 = vor.u32 %v83_v43, %v82_v40  ;;  %v87_v57 = vor.u32 %v86_v45, %v85_v42  ;;  %v90_v58 = vor.u32 %v89_v48, %v88_v46  ;;  %v93_v59 = vor.u32 %v92_v51, %v91_v49 }
  0xa2   :  { %v96_v60 = vor.u32 %v95_v54, %v94_v52 }
  0xa3   :  { %v102_v61 = vsel %vm100_vm2, %v90_v58, 2102212464  ;;  %v105_v62 = vsel %vm97_vm1, %v84_v56, %v87_v57  ;;  %v109_v63 = vsel %vm97_vm1, %v87_v57, %v90_v58  ;;  %v106_v1 = vsel %vm100_vm2, %v93_v59, 920167782 }
  0xa4   :  { %v110_v2 = vsel %vm100_vm2, %v96_v60, 1326507024  ;;  %v107_v3 = vsel %vm99_vm3, %v90_v58, %v106_v1  ;;  %v101_v6 = vsel %vm97_vm1, %v81_v0, %v84_v56  ;;  %v103_v7 = vsel %vm99_vm3, %v87_v57, %v102_v61 }
  0xa5   :  { %v111_v4 = vsel %vm99_vm3, %v93_v59, %v110_v2  ;;  %v108_v8 = vsel %vm98_vm4, %v105_v62, %v107_v3  ;;  %v104_v14 = vsel %vm98_vm4, %v101_v6, %v103_v7 }
  0xa6   :  { %v112_v9 = vsel %vm98_vm4, %v109_v63, %v111_v4  ;;  %v285_v12 = vmul.u32.u64.low %v113_v5, %v108_v8  ;;  %v286_v13 = vmul.u32.u64.high %v113_v5, %v108_v8, %v285_v12  ;;  %v120_v16 = vmul.u32 %v113_v5, %v104_v14 }
  0xa7   :  { %v282_v10 = vmul.u32.u64.low %v113_v5, %v112_v9  ;;  %v283_v11 = vmul.u32.u64.high %v113_v5, %v112_v9, %v282_v10 }
  0xa8   :  { %v123_v15 = vadd.s32 1, %v286_v13 }
  0xa9   :  { %vm122_vm5 = vc.u32 %v283_v11, %v285_v12  ;;  %v121_v29 = vadd.s32 %v285_v12, %v283_v11 }
  0xaa   :  { %v124_v17 = vsel %vm122_vm5, %v123_v15, %v286_v13 }
  0xab   :  { %v125_v18 = vadd.s32 %v124_v17, %v120_v16 }
  0xad   :  { %v126_v19 = vadd.s32 536870912, %v125_v18 }
  0xaf   :  { %v127_v20 = vshrl.u32 %v126_v19, 30 }
  0xb1   :  { %v128_v21 = vshll.u32 %v127_v20, 30  ;;  %v151_v44 = vsub.s32 4, %v127_v20 }
  0xb3   :  { %v129_v22 = vsub.s32 %v125_v18, %v128_v21  ;;  %v152_v46 = vsel %vm67_vm7, %v151_v44, %v127_v20 }
  0xb4   :  { %v154_v47 = vsel %vm66_vm8, 0, %v152_v46 }
  0xb5   :  { %v131_v23 = vsub.s32 0, %v129_v22  ;;  %v158_v48 = vand.u32 3, %v154_v47 }
  0xb7   :  { %v185_v24 = vmin.u32 %v131_v23, %v129_v22  ;;  %vm163_vm9 = vcmp.eq.s32.totalorder %v158_v48, 2  ;;  %vm160_vm10 = vcmp.eq.s32.totalorder %v158_v48, 0  ;;  %vm159_vm11 = vcmp.lt.s32.totalorder %v158_v48, 2 }
  0xb9   :  { %v133_v25 = vclz %v185_v24 }
  0xbb   :  { %v186_v26 = vadd.s32 4294967294, %v133_v25 }
  0xbd   :  { %vm187_vm6 = vcmp.lt.s32.totalorder %v186_v26, 0 }
  0xbe   :  { %v136_v27 = vsel %vm187_vm6, 0, %v186_v26 }
  0xbf   :  { %v137_v30 = vsub.s32 32, %v136_v27  ;;  %v141_v31 = vsub.s32 4294967266, %v136_v27  ;;  %v138_v32 = vshll.u32 %v129_v22, %v136_v27 }
  0xc1   :  { %v139_v34 = vshrl.u32 %v121_v29, %v137_v30  ;;  %v142_v35 = vadd.s32 127, %v141_v31 }
  0xc3   :  { %v140_v36 = vor.u32 %v139_v34, %v138_v32  ;;  %v143_v37 = vshll.u32 %v142_v35, 23 }
  0xc5   :  { %v144_v38 = vor.u32 4788187, %v143_v37  ;;  %v147_v40 = vcvt.s32.f32 %v140_v36 }
  0xc7   :  { %v145_v39 = vand.u32 2147483647, %v144_v38 }
  0xc9   :  { %v148_v41 = vmul.f32 %v147_v40, %v145_v39 }
  0xcb   :  { %v149_v42 = vxor.u32 2147483648, %v148_v41 }
  0xcd   :  { %v150_v43 = vsel %vm67_vm7, %v149_v42, %v148_v41 }
  0xce   :  { %v153_v45 = vsel %vm66_vm8, %v276_v28, %v150_v43 }
  0xcf   :  { %208 = vcosq.f32 %v153_v45 }
  0xd0   :  { %210 = vsinq.f32 %v153_v45 }
  0xd9   :  { %v209_v49 = vpop.eup %208 }
  0xda   :  { %v211_v50 = vpop.eup %210  ;;  %v164_v51 = vxor.u32 2147483648, %v209_v49 }
  0xdb   :  { %v161_v52 = vxor.u32 2147483648, %v211_v50 }
  0xdc   :  { %v165_v53 = vsel %vm163_vm9, %v164_v51, %v211_v50 }
  0xdd   :  { %v162_v33 = vsel %vm160_vm10, %v209_v49, %v161_v52 }
  0xde   :  { %v166_v54 = vsel %vm159_vm11, %v162_v33, %v165_v53 }
  0xdf   :  { %v167_v55 = vsel %vm157_vm12, nan, %v166_v54 }
  0xe0   :  { %168 = vst [vmem:[#allocation2] sm:$0xff] %v167_v55 }
  0xe1   :  { %223 = shalt.err (!%p220_p4)
}
  0xe2   :  { %s224_s20 = scalar_lea.hbm %s312_s3, 128 }
  0xe3   :  { %p225_p5 = scmp.ne.s32.totalorder %s312_s3, %s224_s20  ;;  %p228_p6 = scmp.lt.u32.totalorder %s224_s20, %s312_s3 }
  0xe5   :  { %p230_p7 = pnand %p228_p6, %p225_p5 }
  0xe7   :  { %233 = shalt.err (!%p230_p7)
}
  0xe8   :  { %178 = dma.vmem_to_hbm [thread:$0]  %s176_s2, 128, %s312_s3, [#allocation3]  }
  0xe9   :  { %234 = dma.done.wait [#allocation3], 128  }
  0xea   :  { %235 = vsyncadd [#allocation3], 4294967168 }
  0xeb   :  { %182 = vsyncpa [#allocation3], 1 }

</bundles_post_ra>
